<compile_context>
chip_gen: v5e
topology: v5e:2x2
jax: 0.10.0
libtpu: 0.0.40
codegen_flags: <defaults>
</compile_context>

<pallas_src>
import math

import jax
import jax.numpy as jnp
from jax.experimental import pallas as pl
from jax.experimental.pallas import tpu as pltpu


def value_embedding_kernel(x_ref, w_ref, out_ref):
    # x_ref  : (Bb, S, C)  bf16   batch block, full sequence
    # w_ref  : (3, C, D)   bf16   conv taps, k-major (w_ref[k] == weight[:, :, k].T)
    # out_ref: (Bb, S, D)  f32
    x = x_ref[...]
    bb, s, c = x.shape
    d = w_ref.shape[-1]

    # Per-batch circular shifts along the sequence (sublane) axis.  Cheap sublane slice +
    # concat (pltpu.roll(axis=1) is an equivalent XLU alternative; negligible either way).
    x_prev = jnp.concatenate([x[:, s - 1:, :], x[:, : s - 1, :]], axis=1)  # x[(s-1) % S]
    x_next = jnp.concatenate([x[:, 1:, :], x[:, :1, :]], axis=1)           # x[(s+1) % S]

    # Fold the batch block into the MXU rows: three accumulated (Bb*S, C) @ (C, D) dots with
    # f32 accumulation.  Leading-dim reshape is layout-free; no lane concat anywhere.
    acc = jnp.dot(x_prev.reshape(bb * s, c), w_ref[0], preferred_element_type=jnp.float32)
    acc += jnp.dot(x.reshape(bb * s, c), w_ref[1], preferred_element_type=jnp.float32)
    acc += jnp.dot(x_next.reshape(bb * s, c), w_ref[2], preferred_element_type=jnp.float32)
    out_ref[...] = acc.reshape(bb, s, d).astype(out_ref.dtype)


def prepare_weight(weight):
    """PyTorch Conv1d weight (D, C, 3) -> (3, C, D) bf16, k-major.

    In a real model this runs ONCE at parameter-init time so the relayout / HBM round trip
    is not repeated on every forward call.
    """
    return jnp.transpose(weight, (2, 1, 0)).astype(jnp.bfloat16)


def value_embedding(x, w3, *, block_b=None, out_dtype=jnp.float32):
    """x: (B, S, C) float, w3: (3, C, D) bf16 (from prepare_weight) -> (B, S, D)."""
    B, S, C = x.shape
    K, C_w, D = w3.shape
    assert K == 3 and C_w == C

    # Batch-block size: aim for >=256 matmul rows per grid step (full MXU row fill on
    # v6e/v7x; >=128 already covers v5e) while keeping B % block_b == 0.
    if block_b is None:
        block_b = max(1, min(B, pl.cdiv(256, S)))
    while B % block_b:
        block_b -= 1
    grid = (B // block_b,)

    # bf16 MXU operands (also halves the input DMA); accumulation stays f32 in-kernel.
    x_bf16 = x.astype(jnp.bfloat16)

    # Note for v7x (64 MiB VMEM): when scaling B/S up, cap block_b so the double-buffered
    # (block_b, S, D) f32 output tile stays comfortably in VMEM (set vmem_limit_bytes if
    # raising above the default scoped limit).  At these shapes the defaults are ample.
    return pl.pallas_call(
        value_embedding_kernel,
        out_shape=jax.ShapeDtypeStruct((B, S, D), out_dtype),
        grid=grid,
        in_specs=[
            pl.BlockSpec((block_b, S, C), lambda i: (i, 0, 0)),
            pl.BlockSpec((3, C, D), lambda i: (0, 0, 0)),   # weight stays VMEM-resident
        ],
        out_specs=pl.BlockSpec((block_b, S, D), lambda i: (i, 0, 0)),
        compiler_params=pltpu.CompilerParams(
            # No-op on v5e/v6e (1 TC); shards batch blocks across v7x's two TCs when grid > 1.
            dimension_semantics=("parallel",)),
    )(x_bf16, w3)


if __name__ == "__main__":
    batch, seq, c_in, d_model = 2, 8, 4, 128

    key = jax.random.PRNGKey(0)
    kx, kw = jax.random.split(key)
    x = jax.random.normal(kx, (batch, seq, c_in), dtype=jnp.float32)

    # kaiming_normal_(mode='fan_in', nonlinearity='leaky_relu') init on (D, C, 3).
    fan_in = c_in * 3
    gain = math.sqrt(2.0 / (1.0 + 0.01 ** 2))
    std = gain / math.sqrt(fan_in)
    weight = std * jax.random.normal(kw, (d_model, c_in, 3), dtype=jnp.float32)

    out = value_embedding(x, prepare_weight(weight))
    out = jax.block_until_ready(out)
    assert out.shape == (batch, seq, d_model)

    # Reference 1: exact module semantics in f32 (relaxed tol — kernel uses bf16 MXU operands).
    xp = jnp.concatenate([x[:, -1:, :], x, x[:, :1, :]], axis=1)   # circular pad, (B, S+2, C)
    ref_f32 = sum(
        jnp.einsum('bsc,dc->bsd', xp[:, k:k + seq, :], weight[:, :, k]) for k in range(3)
    )
    assert jnp.allclose(out, ref_f32, atol=5e-2, rtol=5e-2)

    # Reference 2: same bf16-quantized operands, f32 math (tight tol on the kernel itself).
    xq = x.astype(jnp.bfloat16).astype(jnp.float32)
    wq = weight.astype(jnp.bfloat16).astype(jnp.float32)
    xqp = jnp.concatenate([xq[:, -1:, :], xq, xq[:, :1, :]], axis=1)
    ref_q = sum(
        jnp.einsum('bsc,dc->bsd', xqp[:, k:k + seq, :], wq[:, :, k]) for k in range(3)
    )
    assert jnp.allclose(out, ref_q, atol=1e-4, rtol=1e-4)

    print("KERNEL_OK")
</pallas_src>

<mosaic_0001>
module attributes {stable_mosaic.version = 11 : i64} {
  func.func @value_embedding_kernel(%arg0: i32, %arg1: memref<2x8x4xbf16, #tpu.memory_space<vmem>>, %arg2: memref<3x4x128xbf16, #tpu.memory_space<vmem>>, %arg3: memref<2x8x128xf32, #tpu.memory_space<vmem>>) attributes {dimension_semantics = [#tpu.dimension_semantics<parallel>], iteration_bounds = array<i64: 1>, scalar_prefetch = 0 : i64, scratch_operands = 0 : i64, tpu.core_type = #tpu.core_type<tc>, window_params = [{transform_indices = @transform_0, window_bounds = array<i64: 2, 8, 4>}, {pipeline_mode = #tpu.pipeline_mode<synchronous>, transform_indices = @transform_1, window_bounds = array<i64: 3, 4, 128>}, {transform_indices = @transform_2, window_bounds = array<i64: 2, 8, 128>}]} {
    %c0 = arith.constant 0 : index
    %c0_0 = arith.constant 0 : index
    %c0_1 = arith.constant 0 : index
    %0 = vector.load %arg1[%c0, %c0_0, %c0_1] : memref<2x8x4xbf16, #tpu.memory_space<vmem>>, vector<2x8x4xbf16>
    %1 = vector.extract_strided_slice %0 {offsets = [0, 7, 0], sizes = [2, 1, 4], strides = [1, 1, 1]} : vector<2x8x4xbf16> to vector<2x1x4xbf16>
    %2 = vector.extract_strided_slice %0 {offsets = [0, 0, 0], sizes = [2, 7, 4], strides = [1, 1, 1]} : vector<2x8x4xbf16> to vector<2x7x4xbf16>
    %3 = tpu.concatenate %1, %2 in 1 : vector<2x1x4xbf16>, vector<2x7x4xbf16> -> vector<2x8x4xbf16>
    %4 = vector.extract_strided_slice %0 {offsets = [0, 1, 0], sizes = [2, 7, 4], strides = [1, 1, 1]} : vector<2x8x4xbf16> to vector<2x7x4xbf16>
    %5 = vector.extract_strided_slice %0 {offsets = [0, 0, 0], sizes = [2, 1, 4], strides = [1, 1, 1]} : vector<2x8x4xbf16> to vector<2x1x4xbf16>
    %6 = tpu.concatenate %4, %5 in 1 : vector<2x7x4xbf16>, vector<2x1x4xbf16> -> vector<2x8x4xbf16>
    %7 = vector.shape_cast %3 : vector<2x8x4xbf16> to vector<16x4xbf16>
    %c0_2 = arith.constant 0 : index
    %c0_3 = arith.constant 0 : index
    %c0_4 = arith.constant 0 : index
    %8 = vector.load %arg2[%c0_2, %c0_3, %c0_4] : memref<3x4x128xbf16, #tpu.memory_space<vmem>>, vector<1x4x128xbf16>
    %9 = vector.shape_cast %8 : vector<1x4x128xbf16> to vector<4x128xbf16>
    %cst = arith.constant dense<0.000000e+00> : vector<16x128xf32>
    %10 = tpu.matmul %7, %9, %cst {dimension_numbers = #tpu.dot_dimension_numbers<[1], [0], [0], [1], [0, 0, 1, 1], [], []>} : vector<16x4xbf16>, vector<4x128xbf16>, vector<16x128xf32> -> vector<16x128xf32>
    %11 = vector.shape_cast %0 : vector<2x8x4xbf16> to vector<16x4xbf16>
    %c1 = arith.constant 1 : index
    %c0_5 = arith.constant 0 : index
    %c0_6 = arith.constant 0 : index
    %12 = vector.load %arg2[%c1, %c0_5, %c0_6] : memref<3x4x128xbf16, #tpu.memory_space<vmem>>, vector<1x4x128xbf16>
    %13 = vector.shape_cast %12 : vector<1x4x128xbf16> to vector<4x128xbf16>
    %cst_7 = arith.constant dense<0.000000e+00> : vector<16x128xf32>
    %14 = tpu.matmul %11, %13, %cst_7 {dimension_numbers = #tpu.dot_dimension_numbers<[1], [0], [0], [1], [0, 0, 1, 1], [], []>} : vector<16x4xbf16>, vector<4x128xbf16>, vector<16x128xf32> -> vector<16x128xf32>
    %15 = arith.addf %10, %14 : vector<16x128xf32>
    %16 = vector.shape_cast %6 : vector<2x8x4xbf16> to vector<16x4xbf16>
    %c2 = arith.constant 2 : index
    %c0_8 = arith.constant 0 : index
    %c0_9 = arith.constant 0 : index
    %17 = vector.load %arg2[%c2, %c0_8, %c0_9] : memref<3x4x128xbf16, #tpu.memory_space<vmem>>, vector<1x4x128xbf16>
    %18 = vector.shape_cast %17 : vector<1x4x128xbf16> to vector<4x128xbf16>
    %cst_10 = arith.constant dense<0.000000e+00> : vector<16x128xf32>
    %19 = tpu.matmul %16, %18, %cst_10 {dimension_numbers = #tpu.dot_dimension_numbers<[1], [0], [0], [1], [0, 0, 1, 1], [], []>} : vector<16x4xbf16>, vector<4x128xbf16>, vector<16x128xf32> -> vector<16x128xf32>
    %20 = arith.addf %15, %19 : vector<16x128xf32>
    %21 = vector.shape_cast %20 : vector<16x128xf32> to vector<2x8x128xf32>
    %c0_11 = arith.constant 0 : index
    %c0_12 = arith.constant 0 : index
    %c0_13 = arith.constant 0 : index
    %22 = vector.load %arg3[%c0_11, %c0_12, %c0_13] : memref<2x8x128xf32, #tpu.memory_space<vmem>>, vector<2x8x128xf32>
    tpu.vector_store %arg3[%c0_11, %c0_12, %c0_13], %21 {strides = array<i32>} : memref<2x8x128xf32, #tpu.memory_space<vmem>>, vector<2x8x128xf32>,
    return
  }
  func.func @transform_0(%arg0: i32) -> (i32, i32, i32) {
    %c0_i32 = arith.constant 0 : i32
    %c0_i32_0 = arith.constant 0 : i32
    %c0_i32_1 = arith.constant 0 : i32
    return %arg0, %c0_i32, %c0_i32_0 : i32, i32, i32
  }
  func.func @transform_1(%arg0: i32) -> (i32, i32, i32) {
    %c0_i32 = arith.constant 0 : i32
    %c0_i32_0 = arith.constant 0 : i32
    %c0_i32_1 = arith.constant 0 : i32
    %c0_i32_2 = arith.constant 0 : i32
    return %c0_i32, %c0_i32_0, %c0_i32_1 : i32, i32, i32
  }
  func.func @transform_2(%arg0: i32) -> (i32, i32, i32) {
    %c0_i32 = arith.constant 0 : i32
    %c0_i32_0 = arith.constant 0 : i32
    %c0_i32_1 = arith.constant 0 : i32
    return %arg0, %c0_i32, %c0_i32_0 : i32, i32, i32
  }
}

</mosaic_0001>

<bundles_post_ra>
// kernel: tpu_custom_call.1
= control target key start
LH: loop header
LB: loop body
LE: loop exit
PB: predicated region body
PF: predicated region fallthrough
CT: control target
= control target key end

     0   :  { %vm69_vm0 = vcmask 1041408   ;;  %vm65_vm1 = vcmask 31744   ;;  %vm41_vm2 = vcmask 1040384   ;;  %vm42_vm3 = vsmask.f32 256  ;;  %s237_s0 = inlined_call_operand.vmem [shape: bf16[2,8,4], index: 0, kind: input, shape index: {}]   ;;  %s238_s1 = inlined_call_operand.vmem [shape: bf16[3,4,128], index: 1, kind: input, shape index: {}]   ;;  %s239_s2 = inlined_call_operand.hbm [shape: f32[2,8,128], index: 2, kind: output, shape index: {}]  }
   0x1   :  { %v161_v0 = vld [vmem:[%s238_s1 + $0x2] sm:$0x3]  ;;  %v61_v5 = vld [vmem:[%s238_s1] sm:$0x3]  ;;  %v164_v6 = vld [vmem:[%s238_s1 + $0x4] sm:$0x3] }
   0x2   :  { %v167_v1 = vld [vmem:[%s237_s0] sm:$0xff]   ;;  %v71_v2 = vsel %vm69_vm0, %v161_v0, 0  ;;  %v96_v7 = vsel %vm69_vm0, %v61_v5, 0  ;;  %v123_v8 = vsel %vm69_vm0, %v164_v6, 0  ;;  %vm56_vm4 = vcmask 1043456  }
   0x3   :  { %v168_v3 = vunpack.c.l.b16 %v167_v1  ;;  %v169_v4 = vunpack.c.h.b16 %v167_v1  ;;  %80 = vmatpush.bf16.msra.mxu0 %v71_v2  ;;  %105 = vmatpush.bf16.msra.mxu1 %v96_v7  ;;  %vm57_vm5 = vsmask.f32 3328 }
   0x4   :  { %132 = vmatpush.bf16.msra.mxu2 %v123_v8 }
   0x5   :  { %v19_v9 = vpack.c.b16 %v168_v3, %v168_v3  ;;  %v20_v10 = vpack.c.b16 %v169_v4, %v169_v4 }
   0x6   :  { %162 = vmatmul.msk.bf16.vlgmr.msra.gmra.mxu0 %vm65_vm1, %v167_v1 }
   0x7   :  { %v22_v11 = vshrl.u32 %v19_v9, 16  ;;  %v26_v12 = vshrl.u32 %v20_v10, 16  ;;  %v32_v13 = vshll.u32 %v19_v9, 16  ;;  %v36_v14 = vshll.u32 %v20_v10, 16 }
   0x8   :  { %7 = vsyncpa [#allocation3], 0  ;;  %s199_s0 = smov [#allocation2]   ;;  %s149_s19 = sshll.u32 %s239_s2, 4  ;;  %s150_s19 = int_to_ptr.hbm [resolvable:$true] %s149_s19 }
   0x9   :  { %v31_v15 = vrot.slane %v22_v11, 7  ;;  %v35_v16 = vrot.slane %v26_v12, 7  ;;  %v46_v17 = vrot.slane %v32_v13, 1  ;;  %v48_v18 = vrot.slane %v36_v14, 1  ;;  %vm43_vm6 = vmand %vm41_vm2, %vm42_vm3  ;;  %s147_s1 = sshll.u32 %s199_s0, 4  ;;  %s200_s20 = smov 128   ;;  %s148_s1 = int_to_ptr.vmem [resolvable:$true] %s147_s1 }
   0xa   :  { %v24_v19 = vrot.slane %v22_v11, 3  ;;  %v28_v20 = vrot.slane %v26_v12, 3  ;;  %v52_v21 = vrot.slane %v32_v13, 5  ;;  %v53_v22 = vrot.slane %v36_v14, 5  ;;  %vm58_vm7 = vmand %vm56_vm4, %vm57_vm5  ;;  %s201_s21 = smov 8  }
   0xb   :  { %v34_v23 = vor.u32 %v32_v13, %v31_v15  ;;  %v38_v24 = vor.u32 %v36_v14, %v35_v16  ;;  %v47_v25 = vor.u32 %v46_v17, %v22_v11  ;;  %v49_v26 = vor.u32 %v48_v18, %v26_v12 }
   0xd   :  { %v44_v27 = vsel %vm43_vm6, %v24_v19, %v34_v23  ;;  %v45_v28 = vsel %vm43_vm6, %v28_v20, %v38_v24  ;;  %v59_v29 = vsel %vm58_vm7, %v47_v25, %v52_v21  ;;  %v60_v30 = vsel %vm58_vm7, %v49_v26, %v53_v22 }
   0xe   :  { %v89_v31 = vunpack.c.l.b16 %v44_v27  ;;  %v90_v32 = vunpack.c.l.b16 %v45_v28  ;;  %v116_v33 = vunpack.c.l.b16 %v59_v29  ;;  %v117_v34 = vunpack.c.l.b16 %v60_v30 }
  0x10   :  { %v91_v35 = vpack.c.b16 %v90_v32, %v89_v31  ;;  %v118_v36 = vpack.c.b16 %v117_v34, %v116_v33 }
  0x12   :  { %163 = vmatmul.msk.bf16.vlgmr.msra.gmra.mxu1 %vm65_vm1, %v91_v35  ;;  %165 = vmatmul.msk.bf16.vlgmr.msra.gmra.mxu2 %vm65_vm1, %v118_v36 }
  0x83   :  { %v82_v38 = vpop.f32.mrf.mxu0 }
  0x8b   :  { %v84_v43 = vpop.f32.mrf.mxu0 }
  0x8f   :  { %v107_v37 = vpop.f32.mrf.mxu1 }
  0x90   :  { %v108_v39 = vadd.f32 %v107_v37, %v82_v38 }
  0x95   :  { %v134_v40 = vpop.f32.mrf.mxu2 }
  0x96   :  { %v139_v41 = vadd.f32 %v134_v40, %v108_v39 }
  0x97   :  { %v109_v42 = vpop.f32.mrf.mxu1 }
  0x98   :  { %141 = vst [vmem:[#allocation2] sm:$0xff] %v139_v41  ;;  %v110_v44 = vadd.f32 %v109_v42, %v84_v43 }
  0x9d   :  { %v136_v45 = vpop.f32.mrf.mxu2 }
  0x9e   :  { %v140_v46 = vadd.f32 %v136_v45, %v110_v44 }
  0xa0   :  { %142 = vst [vmem:[#allocation2 + $0x8] sm:$0xff] %v140_v46 }
  0xa1   :  { %155 = dma.vmem_to_hbm [thread:$0]  %s148_s1, 256, %s150_s19, [#allocation3], %s200_s20, %s200_s20, %s201_s21  }
  0xa2   :  { %197 = dma.done.wait [#allocation3], 256  }
  0xa3   :  { %198 = vsyncadd [#allocation3], 4294967040 }
  0xa4   :  { %160 = vsyncpa [#allocation3], 1 }

</bundles_post_ra>
